<compile_context>
chip_gen: v7x
topology: tpu7x:2x2x1
jax: 0.10.0
libtpu: 0.0.40
codegen_flags: <defaults>
</compile_context>

<pallas_src>
import jax
import jax.numpy as jnp
from jax import lax
from jax.experimental import pallas as pl
from jax.experimental.pallas import tpu as pltpu

_LANES = 128


def _focal_elements(y, t, gamma):
    """Elementwise focal loss, computed in f32 regardless of input dtype."""
    y = y.astype(jnp.float32)
    t = t.astype(jnp.float32)
    p = jax.nn.sigmoid(y)
    pt = p * t + (1.0 - p) * (1.0 - t)
    log_pt = jnp.log(pt)
    q = 1.0 - pt
    g = float(gamma)
    if g.is_integer() and 0 <= g <= 16:
        # Integer fast path: repeated multiply on the VPU (no extra EUP ops).
        gi = int(g)
        if gi == 0:
            w = jnp.ones_like(q)  # matches torch: 0**0 == 1
        else:
            w = q
            for _ in range(gi - 1):
                w = w * q
    else:
        # Non-integer gamma: fall back to pow (exp/log on the EUP).
        w = q ** jnp.float32(g)
    return -w * log_pt


def _make_partial_sum_kernel(gamma, total, t_rows, needs_mask):
    full_rows = total // _LANES
    rem = total % _LANES

    def kernel(y_ref, t_ref, out_ref):
        focal = _focal_elements(y_ref[...], t_ref[...], gamma)
        if needs_mask:
            # Mask elements past the logical end (ragged last block / <128 pad).
            i = pl.program_id(0)
            row = lax.broadcasted_iota(jnp.int32, focal.shape, 0) + i * t_rows
            col = lax.broadcasted_iota(jnp.int32, focal.shape, 1)
            valid = (row < full_rows) | ((row == full_rows) & (col < rem))
            focal = jnp.where(valid, focal, 0.0)
        # Fold sublane-groups-of-8 with pure VPU adds; the cross-lane reduce of
        # the tiny (num_blocks*8, 128) partial-sum array happens in the wrapper.
        out_ref[...] = jnp.sum(focal.reshape(t_rows // 8, 8, _LANES), axis=0)

    return kernel


def _make_elementwise_kernel(gamma):
    def kernel(y_ref, t_ref, out_ref):
        out_ref[...] = _focal_elements(y_ref[...], t_ref[...], gamma)

    return kernel


def focal_loss(y_pred, target, gamma=2, reduction="mean", tile_rows=1024):
    if y_pred.shape != target.shape:
        raise ValueError(
            f"y_pred size ({y_pred.shape}) must be the same as target size ({target.shape})"
        )

    total = int(y_pred.size)
    padded = pl.cdiv(total, _LANES) * _LANES
    rows = padded // _LANES

    # Effective block rows: multiple of 8, at least 8, and never much larger
    # than the array itself.
    rows8 = pl.cdiv(rows, 8) * 8
    t_rows = max(8, min((int(tile_rows) // 8) * 8, rows8))
    num_blocks = pl.cdiv(rows, t_rows)

    # Native-dtype flatten (free for contiguous inputs); pad <128 trailing
    # elements only when not lane-aligned — pad values are masked in-kernel.
    yf = jnp.ravel(y_pred)
    tf = jnp.ravel(target)
    if padded != total:
        yf = jnp.pad(yf, (0, padded - total))
        tf = jnp.pad(tf, (0, padded - total))
    y2d = yf.reshape(rows, _LANES)
    t2d = tf.reshape(rows, _LANES)

    needs_mask = (num_blocks * t_rows * _LANES) != total
    in_specs = [
        pl.BlockSpec((t_rows, _LANES), lambda i: (i, 0)),
        pl.BlockSpec((t_rows, _LANES), lambda i: (i, 0)),
    ]
    params = pltpu.CompilerParams(dimension_semantics=("parallel",))

    if reduction in ("mean", "sum"):
        partial = pl.pallas_call(
            _make_partial_sum_kernel(float(gamma), total, t_rows, needs_mask),
            out_shape=jax.ShapeDtypeStruct((num_blocks * 8, _LANES), jnp.float32),
            grid_spec=pltpu.PrefetchScalarGridSpec(
                num_scalar_prefetch=0,
                grid=(num_blocks,),
                in_specs=in_specs,
                out_specs=pl.BlockSpec((8, _LANES), lambda i: (i, 0)),
            ),
            compiler_params=params,
        )(y2d, t2d)
        s = jnp.sum(partial)
        if reduction == "mean":
            return s / jnp.float32(total)
        return s
    elif reduction == "none":
        out2d = pl.pallas_call(
            _make_elementwise_kernel(float(gamma)),
            out_shape=jax.ShapeDtypeStruct((num_blocks * t_rows, _LANES), jnp.float32),
            grid_spec=pltpu.PrefetchScalarGridSpec(
                num_scalar_prefetch=0,
                grid=(num_blocks,),
                in_specs=in_specs,
                out_specs=pl.BlockSpec((t_rows, _LANES), lambda i: (i, 0)),
            ),
            compiler_params=params,
        )(y2d, t2d)
        # TODO(synk): output is returned in f32 (kernel compute dtype) rather
        # than the exact torch-promoted input dtype.
        return out2d.reshape(-1)[:total].reshape(y_pred.shape)
    else:
        raise ValueError(f"unknown reduction: {reduction!r}")


def focal_loss_ref(y_pred, target, gamma=2, reduction="mean"):
    p = jax.nn.sigmoid(y_pred.astype(jnp.float32))
    t = target.astype(jnp.float32)
    pt = p * t + (1 - p) * (1 - t)
    fl = -((1 - pt) ** gamma) * jnp.log(pt)
    if reduction == "mean":
        return jnp.mean(fl)
    elif reduction == "sum":
        return jnp.sum(fl)
    return fl


if __name__ == "__main__":
    key = jax.random.PRNGKey(0)
    k1, k2, k3, k4 = jax.random.split(key, 4)

    # NCHW inputs, same shape for prediction logits and binary targets.
    shape = (2, 4, 16, 16)
    y_pred = jax.random.normal(k1, shape, dtype=jnp.float32)
    target = (jax.random.uniform(k2, shape) > 0.5).astype(jnp.float32)

    out = focal_loss(y_pred, target, gamma=2, reduction="mean")
    out = jax.block_until_ready(out)
    ref = focal_loss_ref(y_pred, target, gamma=2, reduction="mean")
    assert jnp.allclose(out, ref, rtol=1e-5, atol=1e-6), (out, ref)

    # Ragged, non-lane-aligned shape exercises the in-kernel mask path.
    shape2 = (3, 5, 7)
    y2 = jax.random.normal(k3, shape2, dtype=jnp.float32)
    t2 = (jax.random.uniform(k4, shape2) > 0.5).astype(jnp.float32)
    out2 = jax.block_until_ready(focal_loss(y2, t2, gamma=2, reduction="sum"))
    ref2 = focal_loss_ref(y2, t2, gamma=2, reduction="sum")
    assert jnp.allclose(out2, ref2, rtol=1e-5, atol=1e-5), (out2, ref2)

    # Elementwise ('none') path.
    out3 = jax.block_until_ready(focal_loss(y2, t2, gamma=2, reduction="none"))
    ref3 = focal_loss_ref(y2, t2, gamma=2, reduction="none")
    assert out3.shape == shape2
    assert jnp.allclose(out3, ref3, rtol=1e-5, atol=1e-6)

    print("KERNEL_OK")
</pallas_src>

<mosaic_0001>
module attributes {stable_mosaic.version = 11 : i64} {
  func.func @kernel(%arg0: i32, %arg1: memref<16x128xf32, #tpu.memory_space<vmem>>, %arg2: memref<16x128xf32, #tpu.memory_space<vmem>>, %arg3: memref<8x128xf32, #tpu.memory_space<vmem>>) attributes {dimension_semantics = [#tpu.dimension_semantics<parallel>], iteration_bounds = array<i64: 1>, scalar_prefetch = 0 : i64, scratch_operands = 0 : i64, tpu.core_type = #tpu.core_type<tc>, window_params = [{transform_indices = @transform_0, window_bounds = array<i64: 16, 128>}, {transform_indices = @transform_1, window_bounds = array<i64: 16, 128>}, {transform_indices = @transform_2, window_bounds = array<i64: 8, 128>}]} {
    %c0 = arith.constant 0 : index
    %c0_0 = arith.constant 0 : index
    %0 = vector.load %arg1[%c0, %c0_0] : memref<16x128xf32, #tpu.memory_space<vmem>>, vector<16x128xf32>
    %c0_1 = arith.constant 0 : index
    %c0_2 = arith.constant 0 : index
    %1 = vector.load %arg2[%c0_1, %c0_2] : memref<16x128xf32, #tpu.memory_space<vmem>>, vector<16x128xf32>
    %2 = arith.negf %0 : vector<16x128xf32>
    %3 = math.exp %2 : vector<16x128xf32>
    %cst = arith.constant 1.000000e+00 : f32
    %4 = vector.broadcast %cst : f32 to vector<16x128xf32>
    %5 = arith.addf %4, %3 : vector<16x128xf32>
    %6 = arith.divf %4, %5 : vector<16x128xf32>
    %7 = arith.mulf %6, %1 : vector<16x128xf32>
    %cst_3 = arith.constant 1.000000e+00 : f32
    %8 = vector.broadcast %cst_3 : f32 to vector<16x128xf32>
    %9 = arith.subf %8, %6 : vector<16x128xf32>
    %cst_4 = arith.constant 1.000000e+00 : f32
    %10 = vector.broadcast %cst_4 : f32 to vector<16x128xf32>
    %11 = arith.subf %10, %1 : vector<16x128xf32>
    %12 = arith.mulf %9, %11 : vector<16x128xf32>
    %13 = arith.addf %7, %12 : vector<16x128xf32>
    %14 = math.log %13 : vector<16x128xf32>
    %cst_5 = arith.constant 1.000000e+00 : f32
    %15 = vector.broadcast %cst_5 : f32 to vector<16x128xf32>
    %16 = arith.subf %15, %13 : vector<16x128xf32>
    %17 = arith.mulf %16, %16 : vector<16x128xf32>
    %cst_6 = arith.constant 0.000000e+00 : f32
    %18 = vector.broadcast %cst_6 : f32 to vector<16x128xf32>
    %19 = arith.subf %18, %17 : vector<16x128xf32>
    %20 = arith.mulf %19, %14 : vector<16x128xf32>
    %21 = vector.shape_cast %20 : vector<16x128xf32> to vector<2x8x128xf32>
    %cst_7 = arith.constant dense<0.000000e+00> : vector<8x128xf32>
    %22 = vector.multi_reduction <add>, %21, %cst_7 [0] : vector<2x8x128xf32> to vector<8x128xf32>
    %c0_8 = arith.constant 0 : index
    %c0_9 = arith.constant 0 : index
    %23 = vector.load %arg3[%c0_8, %c0_9] : memref<8x128xf32, #tpu.memory_space<vmem>>, vector<8x128xf32>
    tpu.vector_store %arg3[%c0_8, %c0_9], %22 {strides = array<i32>} : memref<8x128xf32, #tpu.memory_space<vmem>>, vector<8x128xf32>,
    return
  }
  func.func @transform_0(%arg0: i32) -> (i32, i32) {
    %c0_i32 = arith.constant 0 : i32
    %c0_i32_0 = arith.constant 0 : i32
    return %arg0, %c0_i32 : i32, i32
  }
  func.func @transform_1(%arg0: i32) -> (i32, i32) {
    %c0_i32 = arith.constant 0 : i32
    %c0_i32_0 = arith.constant 0 : i32
    return %arg0, %c0_i32 : i32, i32
  }
  func.func @transform_2(%arg0: i32) -> (i32, i32) {
    %c0_i32 = arith.constant 0 : i32
    %c0_i32_0 = arith.constant 0 : i32
    return %arg0, %c0_i32 : i32, i32
  }
}

</mosaic_0001>

<bundles_post_ra>
// kernel: tpu_custom_call.1
= control target key start
LH: loop header
LB: loop body
LE: loop exit
PB: predicated region body
PF: predicated region fallthrough
CT: control target
= control target key end

     0   :  { %7 = vsyncpa [#allocation3], 0  ;;  %s243_s0 = inlined_call_operand.hbm [shape: f32[16,128], index: 0, kind: input, shape index: {}]   ;;  %s244_s1 = inlined_call_operand.hbm [shape: f32[16,128], index: 1, kind: input, shape index: {}]   ;;  %s245_s2 = inlined_call_operand.hbm [shape: f32[8,128], index: 2, kind: output, shape index: {}]  }
   0x1   :  { %8 = vsyncpa [#allocation6], 0 }
   0x2   :  { %9 = vsyncpa [#allocation4], 0  ;;  %s187_s9 = smov [#allocation2]   ;;  %s115_s13 = scalar_lea.hbm %s243_s0, 256 }
   0x3   :  { %s15_s10 = sshll.u32 %s187_s9, 4  ;;  %p116_p0 = scmp.ne.s32.totalorder %s243_s0, %s115_s13  ;;  %s16_s10 = int_to_ptr.vmem [resolvable:$true] %s15_s10 }
   0x4   :  { %p119_p1 = scmp.lt.u32.totalorder %s115_s13, %s243_s0 }
   0x6   :  { %p121_p2 = pnand %p119_p1, %p116_p0 }
   0x8   :  { %124 = shalt.err (!%p121_p2)
}
   0x9   :  { %s125_s18 = scalar_lea.vmem %s16_s10, 256  ;;  %p130_p4 = scmp.lt.s32.totalorder %s16_s10, %s16_s10 }
   0xa   :  { %p126_p3 = scmp.ne.s32.totalorder %s16_s10, %s125_s18  ;;  %p131_p5 = scmp.lt.s32.totalorder %s125_s18, %s125_s18 }
   0xc   :  { %p132_p6 = por %p131_p5, %p130_p4 }
   0xe   :  { %p133_p7 = pnand %p132_p6, %p126_p3 }
  0x10   :  { %136 = shalt.err (!%p133_p7)
}
  0x11   :  { %s188_s19 = smov 128   ;;  %s189_s20 = smov 8  }
  0x12   :  { %21 = dma.hbm_to_vmem [thread:$0]  %s243_s0, 256, %s16_s10, [#allocation3], %s188_s19, %s188_s19, %s189_s20  }
  0x13   :  { %s190_s23 = smov [#allocation5]   ;;  %s137_s27 = scalar_lea.hbm %s244_s1, 256 }
  0x14   :  { %s27_s24 = sshll.u32 %s190_s23, 4  ;;  %p138_p8 = scmp.ne.s32.totalorder %s244_s1, %s137_s27  ;;  %s28_s24 = int_to_ptr.vmem [resolvable:$true] %s27_s24 }
  0x15   :  { %p141_p9 = scmp.lt.u32.totalorder %s137_s27, %s244_s1 }
  0x17   :  { %p143_p10 = pnand %p141_p9, %p138_p8 }
  0x19   :  { %146 = shalt.err (!%p143_p10)
}
  0x1a   :  { %s147_s4 = scalar_lea.vmem %s28_s24, 256  ;;  %p152_p12 = scmp.lt.s32.totalorder %s28_s24, %s28_s24 }
  0x1b   :  { %p148_p11 = scmp.ne.s32.totalorder %s28_s24, %s147_s4  ;;  %p153_p13 = scmp.lt.s32.totalorder %s147_s4, %s147_s4 }
  0x1d   :  { %p154_p0 = por %p153_p13, %p152_p12 }
  0x1f   :  { %p155_p1 = pnand %p154_p0, %p148_p11 }
  0x21   :  { %158 = shalt.err (!%p155_p1)
}
  0x22   :  { %33 = dma.hbm_to_vmem [thread:$0]  %s244_s1, 256, %s28_s24, [#allocation6], %s188_s19, %s188_s19, %s189_s20  }
  0x23   :  { %181 = dma.done.wait [#allocation3], 256  }
  0x24   :  { %182 = vsyncadd [#allocation3], 4294967040 }
  0x25   :  { %183 = dma.done.wait [#allocation6], 256  }
  0x26   :  { %184 = vsyncadd [#allocation6], 4294967040  ;;  %v40_v0 = vld [vmem:[#allocation2] sm:$0xff]  ;;  %v41_v1 = vld [vmem:[#allocation2 + $0x8] sm:$0xff]  ;;  %s191_s1 = smov [#allocation7]  }
  0x27   :  { %v96_v2 = vmul.f32 -1.442695, %v40_v0  ;;  %v97_v3 = vmul.f32 -1.442695, %v41_v1  ;;  %v42_v8 = vld [vmem:[#allocation5] sm:$0xff]  ;;  %v43_v9 = vld [vmem:[#allocation5 + $0x8] sm:$0xff] }
  0x28   :  { %v60_v10 = vsub.f32 1.0, %v42_v8  ;;  %v61_v12 = vsub.f32 1.0, %v43_v9  ;;  %s86_s6 = sshll.u32 %s191_s1, 4  ;;  %s87_s6 = int_to_ptr.vmem [resolvable:$true] %s86_s6 }
  0x29   :  { %103 = vpow2.f32 %v96_v2  ;;  %s159_s7 = scalar_lea.vmem %s87_s6, 128  ;;  %p164_p3 = scmp.lt.s32.totalorder %s87_s6, %s87_s6 }
  0x2a   :  { %105 = vpow2.f32 %v97_v3  ;;  %p160_p2 = scmp.ne.s32.totalorder %s87_s6, %s159_s7  ;;  %p165_p4 = scmp.lt.s32.totalorder %s159_s7, %s159_s7 }
  0x2c   :  { %p166_p5 = por %p165_p4, %p164_p3 }
  0x2e   :  { %p167_p6 = pnand %p166_p5, %p160_p2 }
  0x33   :  { %v104_v4 = vpop.eup %103 }
  0x34   :  { %v106_v5 = vpop.eup %105  ;;  %v50_v6 = vadd.f32 1.0, %v104_v4 }
  0x35   :  { %v51_v7 = vadd.f32 1.0, %v106_v5 }
  0x36   :  { %107 = vrcp.f32 %v50_v6 }
  0x37   :  { %109 = vrcp.f32 %v51_v7 }
  0x40   :  { %v108_v11 = vpop.eup %107 }
  0x41   :  { %v110_v13 = vpop.eup %109  ;;  %v56_v14 = vmul.f32 %v108_v11, %v42_v8  ;;  %v58_v15 = vsub.f32 1.0, %v108_v11 }
  0x42   :  { %v57_v16 = vmul.f32 %v110_v13, %v43_v9  ;;  %v59_v17 = vsub.f32 1.0, %v110_v13 }
  0x43   :  { %v62_v18 = vmul.f32 %v60_v10, %v58_v15 }
  0x44   :  { %v63_v19 = vmul.f32 %v61_v12, %v59_v17 }
  0x45   :  { %v64_v20 = vadd.f32 %v62_v18, %v56_v14 }
  0x46   :  { %v65_v21 = vadd.f32 %v63_v19, %v57_v16 }
  0x47   :  { %111 = vlog2.f32 %v64_v20  ;;  %v70_v22 = vsub.f32 1.0, %v64_v20 }
  0x48   :  { %113 = vlog2.f32 %v65_v21  ;;  %v71_v23 = vsub.f32 1.0, %v65_v21 }
  0x49   :  { %v72_v24 = vmul.f32 %v70_v22, %v70_v22 }
  0x4a   :  { %v73_v25 = vmul.f32 %v71_v23, %v71_v23 }
  0x4b   :  { %v74_v26 = vsub.f32 0.0, %v72_v24 }
  0x4c   :  { %v75_v28 = vsub.f32 0.0, %v73_v25 }
  0x51   :  { %v112_v27 = vpop.eup %111 }
  0x52   :  { %v114_v29 = vpop.eup %113  ;;  %v67_v30 = vmul.f32 0.6931472, %v112_v27 }
  0x53   :  { %v69_v31 = vmul.f32 0.6931472, %v114_v29 }
  0x54   :  { %v76_v32 = vmul.f32 %v74_v26, %v67_v30 }
  0x55   :  { %v77_v33 = vmul.f32 %v75_v28, %v69_v31 }
  0x57   :  { %v78_v34 = vadd.f32 %v77_v33, %v76_v32 }
  0x59   :  { %79 = vst [vmem:[#allocation7] sm:$0xff] %v78_v34 }
  0x5a   :  { %170 = shalt.err (!%p167_p6)
}
  0x5b   :  { %s171_s10 = scalar_lea.hbm %s245_s2, 128 }
  0x5c   :  { %p172_p7 = scmp.ne.s32.totalorder %s245_s2, %s171_s10  ;;  %p175_p8 = scmp.lt.u32.totalorder %s171_s10, %s245_s2 }
  0x5e   :  { %p177_p9 = pnand %p175_p8, %p172_p7 }
  0x60   :  { %180 = shalt.err (!%p177_p9)
}
  0x61   :  { %89 = dma.vmem_to_hbm [thread:$0]  %s87_s6, 128, %s245_s2, [#allocation4]  }
  0x62   :  { %185 = dma.done.wait [#allocation4], 128  }
  0x63   :  { %186 = vsyncadd [#allocation4], 4294967168 }
  0x64   :  { %93 = vsyncpa [#allocation3], 1 }
  0x65   :  { %94 = vsyncpa [#allocation6], 1 }
  0x66   :  { %95 = vsyncpa [#allocation4], 1 }

</bundles_post_ra>
